<compile_context>
chip_gen: v7x
topology: tpu7x:2x2x1
jax: 0.10.0
libtpu: 0.0.40
codegen_flags: <defaults>
</compile_context>

<pallas_src>
import jax
import jax.numpy as jnp
from jax.experimental import pallas as pl
from jax.experimental.pallas import tpu as pltpu

# ----------------------------------------------------------------------------
# Synthetic, deterministic stand-in for the external DATASETS dict
# (the original module reads `class_values` and `selector` from it).
# ----------------------------------------------------------------------------
DATASETS = {
    "messidor": {"class_values": [0, 1, 2, 3]},
    "idrid":    {"class_values": [0, 1, 2, 3, 4]},
    "refuge":   {"class_values": [0, 1]},
}
N_CLASSES = sum(len(DATASETS[d]["class_values"]) for d in DATASETS)

_offset = 0
for _name in DATASETS:
    _n = len(DATASETS[_name]["class_values"])
    _sel = [0.0] * N_CLASSES
    for _j in range(_n):
        _sel[_offset + _j] = 1.0
    DATASETS[_name]["selector"] = _sel
    DATASETS[_name]["offset"] = _offset
    DATASETS[_name]["length"] = _n
    _offset += _n

_BATCH_TILE = 2048  # lane-axis tile (multiple of 128); ~180 KB double-buffered VMEM


def _round_up(x, m):
    return ((x + m - 1) // m) * m


# ----------------------------------------------------------------------------
# Pallas kernel — one batch tile per grid step.
#   pred_ref : (C, TB) logits, classes on sublanes, batch on lanes
#   meta_ref : (3, TB) int32  rows = [ground, selector_offset, selector_length]
#   out_ref  : (1, TB) per-sample partial losses (NaN already zeroed)
# ----------------------------------------------------------------------------
def _mtl_selector_loss_kernel(pred_ref, meta_ref, out_ref):
    pred = pred_ref[...].astype(jnp.float32)             # (C, TB)
    meta = meta_ref[...]                                   # (3, TB) int32
    ground = meta[0:1, :]                                  # (1, TB)
    sel_off = meta[1:2, :]                                 # (1, TB)
    sel_len = meta[2:3, :]                                 # (1, TB)

    n_classes = pred.shape[0]
    cls = jax.lax.broadcasted_iota(jnp.int32, pred.shape, dimension=0)  # (C, TB)

    # Selector mask rebuilt from (offset, length); one-hot target from ground.
    sel = jnp.logical_and(cls >= sel_off, cls < sel_off + sel_len).astype(jnp.float32)
    y = (cls == ground).astype(jnp.float32)

    # Unstabilized softmax (matches torch: exp(x) / sum(exp(x))), with the
    # per-element divide hoisted to a single per-sample reciprocal.
    e = jnp.exp(pred)                                      # (C, TB)  EUP
    s = jnp.sum(e, axis=0, keepdims=True)                  # (1, TB)  sublane reduce
    inv_s = pl.reciprocal(s, approx=False)                 # exact; keeps 1e-5 fidelity
    probs = e * inv_s                                       # (C, TB)

    # Selector-masked binary cross-entropy, normalized by n_classes.
    terms = sel * (y * jnp.log(probs) + (1.0 - y) * jnp.log(1.0 - probs))
    partial = -jnp.sum(terms, axis=0, keepdims=True) * jnp.float32(1.0 / n_classes)

    # math.isnan(partial_loss) -> 0.0, per sample.
    out_ref[...] = jnp.where(jnp.isnan(partial), jnp.zeros_like(partial), partial)


def mtl_retinal_selector_loss(predictions, grounds, dataset_names):
    """predictions: (B, C) float, grounds: (B,) or (B,1) int, dataset_names: list[str]."""
    predictions = jnp.asarray(predictions)
    batch, n_classes = predictions.shape
    assert n_classes == N_CLASSES
    assert len(dataset_names) == batch

    grounds = jnp.asarray(grounds, dtype=jnp.int32).reshape(batch)
    offsets = jnp.asarray([DATASETS[n]["offset"] for n in dataset_names], dtype=jnp.int32)
    lengths = jnp.asarray([DATASETS[n]["length"] for n in dataset_names], dtype=jnp.int32)

    # Lane-dense layout: batch on the 128-lane axis, classes on sublanes.
    pred_t = predictions.T                                   # (C, B)
    meta = jnp.stack([grounds, offsets, lengths], axis=0)    # (3, B)

    # Lane-align the batch axis: tile is always a multiple of 128 and b_pad a
    # multiple of tile.  Padded samples have selector length 0 -> partial loss
    # is exactly 0 (finite, no NaN path).
    tile = min(_BATCH_TILE, _round_up(batch, 128))
    b_pad = _round_up(batch, tile)
    if b_pad != batch:
        pred_t = jnp.pad(pred_t, ((0, 0), (0, b_pad - batch)))
        meta = jnp.pad(meta, ((0, 0), (0, b_pad - batch)))

    partials = pl.pallas_call(
        _mtl_selector_loss_kernel,
        out_shape=jax.ShapeDtypeStruct((1, b_pad), jnp.float32),
        grid=(b_pad // tile,),
        in_specs=[
            pl.BlockSpec((n_classes, tile), lambda i: (0, i)),
            pl.BlockSpec((3, tile), lambda i: (0, i)),
        ],
        out_specs=pl.BlockSpec((1, tile), lambda i: (0, i)),
        compiler_params=pltpu.CompilerParams(
            dimension_semantics=("parallel",),
            vmem_limit_bytes=32 * 1024 * 1024,
        ),
    )(pred_t, meta)

    # Batch sum of per-sample partial losses (padding contributes exactly 0,
    # but slice anyway).
    return jnp.sum(partials[0, :batch])


# ----------------------------------------------------------------------------
# Pure-JAX reference (faithful to the torch formulation) for correctness check.
# ----------------------------------------------------------------------------
def _reference_loss(predictions, grounds, dataset_names):
    n_classes = predictions.shape[-1]
    selectors = jnp.asarray(
        [DATASETS[name]["selector"] for name in dataset_names], dtype=jnp.float32
    )
    e = jnp.exp(predictions)
    probs = e / jnp.sum(e, axis=-1, keepdims=True)
    y = jax.nn.one_hot(jnp.asarray(grounds).reshape(-1), n_classes, dtype=jnp.float32)
    terms = selectors * (y * jnp.log(probs) + (1.0 - y) * jnp.log(1.0 - probs))
    partial = -jnp.sum(terms, axis=-1) / n_classes
    partial = jnp.where(jnp.isnan(partial), 0.0, partial)
    return jnp.sum(partial)


if __name__ == "__main__":
    key = jax.random.PRNGKey(0)
    kp, kg = jax.random.split(key)

    names = list(DATASETS.keys())
    B = 6
    dataset_names = [names[i % len(names)] for i in range(B)]

    predictions = jax.random.normal(kp, (B, N_CLASSES), dtype=jnp.float32)

    ground_list = []
    for i, name in enumerate(dataset_names):
        off = DATASETS[name]["offset"]
        n = DATASETS[name]["length"]
        g = int(jax.random.randint(jax.random.fold_in(kg, i), (), 0, n))
        ground_list.append(off + g)
    grounds = jnp.array(ground_list, dtype=jnp.int32)

    loss = mtl_retinal_selector_loss(predictions, grounds, dataset_names)
    loss = jax.block_until_ready(loss)

    ref = _reference_loss(predictions, grounds, dataset_names)
    assert jnp.allclose(loss, ref, rtol=1e-5, atol=1e-5), (loss, ref)

    print("KERNEL_OK")
</pallas_src>

<mosaic_0001>
module attributes {stable_mosaic.version = 11 : i64} {
  func.func @_mtl_selector_loss_kernel(%arg0: i32, %arg1: memref<11x128xf32, #tpu.memory_space<vmem>>, %arg2: memref<3x128xi32, #tpu.memory_space<vmem>>, %arg3: memref<1x128xf32, #tpu.memory_space<vmem>>) attributes {dimension_semantics = [#tpu.dimension_semantics<parallel>], iteration_bounds = array<i64: 1>, scalar_prefetch = 0 : i64, scratch_operands = 0 : i64, tpu.core_type = #tpu.core_type<tc>, window_params = [{transform_indices = @transform_0, window_bounds = array<i64: 11, 128>}, {transform_indices = @transform_1, window_bounds = array<i64: 3, 128>}, {transform_indices = @transform_2, window_bounds = array<i64: 1, 128>}]} {
    %c0 = arith.constant 0 : index
    %c0_0 = arith.constant 0 : index
    %0 = vector.load %arg1[%c0, %c0_0] : memref<11x128xf32, #tpu.memory_space<vmem>>, vector<11x128xf32>
    %c0_1 = arith.constant 0 : index
    %c0_2 = arith.constant 0 : index
    %1 = vector.load %arg2[%c0_1, %c0_2] : memref<3x128xi32, #tpu.memory_space<vmem>>, vector<3x128xi32>
    %2 = vector.extract_strided_slice %1 {offsets = [0, 0], sizes = [1, 128], strides = [1, 1]} : vector<3x128xi32> to vector<1x128xi32>
    %3 = vector.extract_strided_slice %1 {offsets = [1, 0], sizes = [1, 128], strides = [1, 1]} : vector<3x128xi32> to vector<1x128xi32>
    %4 = vector.extract_strided_slice %1 {offsets = [2, 0], sizes = [1, 128], strides = [1, 1]} : vector<3x128xi32> to vector<1x128xi32>
    %5 = tpu.iota {dimensions = array<i32: 0>} : vector<11x128xi32>
    %6 = vector.broadcast %3 : vector<1x128xi32> to vector<11x128xi32>
    %7 = arith.cmpi sge, %5, %6 : vector<11x128xi32>
    %8 = arith.addi %3, %4 : vector<1x128xi32>
    %9 = vector.broadcast %8 : vector<1x128xi32> to vector<11x128xi32>
    %10 = arith.cmpi slt, %5, %9 : vector<11x128xi32>
    %11 = arith.andi %7, %10 : vector<11x128xi1>
    %12 = arith.extui %11 : vector<11x128xi1> to vector<11x128xi32>
    %13 = arith.sitofp %12 : vector<11x128xi32> to vector<11x128xf32>
    %14 = vector.broadcast %2 : vector<1x128xi32> to vector<11x128xi32>
    %15 = arith.cmpi eq, %5, %14 : vector<11x128xi32>
    %16 = arith.extui %15 : vector<11x128xi1> to vector<11x128xi32>
    %17 = arith.sitofp %16 : vector<11x128xi32> to vector<11x128xf32>
    %18 = math.exp %0 : vector<11x128xf32>
    %cst = arith.constant dense<0.000000e+00> : vector<128xf32>
    %19 = vector.multi_reduction <add>, %18, %cst [0] : vector<11x128xf32> to vector<128xf32>
    %20 = vector.shape_cast %19 : vector<128xf32> to vector<1x128xf32>
    %21 = tpu.reciprocal %20 : vector<1x128xf32> -> vector<1x128xf32>
    %22 = vector.broadcast %21 : vector<1x128xf32> to vector<11x128xf32>
    %23 = arith.mulf %18, %22 : vector<11x128xf32>
    %24 = math.log %23 : vector<11x128xf32>
    %25 = arith.mulf %17, %24 : vector<11x128xf32>
    %cst_3 = arith.constant 1.000000e+00 : f32
    %26 = vector.broadcast %cst_3 : f32 to vector<11x128xf32>
    %27 = arith.subf %26, %17 : vector<11x128xf32>
    %cst_4 = arith.constant 1.000000e+00 : f32
    %28 = vector.broadcast %cst_4 : f32 to vector<11x128xf32>
    %29 = arith.subf %28, %23 : vector<11x128xf32>
    %30 = math.log %29 : vector<11x128xf32>
    %31 = arith.mulf %27, %30 : vector<11x128xf32>
    %32 = arith.addf %25, %31 : vector<11x128xf32>
    %33 = arith.mulf %13, %32 : vector<11x128xf32>
    %cst_5 = arith.constant dense<0.000000e+00> : vector<128xf32>
    %34 = vector.multi_reduction <add>, %33, %cst_5 [0] : vector<11x128xf32> to vector<128xf32>
    %35 = vector.shape_cast %34 : vector<128xf32> to vector<1x128xf32>
    %cst_6 = arith.constant 0.000000e+00 : f32
    %36 = vector.broadcast %cst_6 : f32 to vector<1x128xf32>
    %37 = arith.subf %36, %35 : vector<1x128xf32>
    %cst_7 = arith.constant 0.0909090936 : f32
    %38 = vector.broadcast %cst_7 : f32 to vector<1x128xf32>
    %39 = arith.mulf %37, %38 : vector<1x128xf32>
    %40 = arith.cmpf one, %39, %39 : vector<1x128xf32>
    %cst_8 = arith.constant 0.000000e+00 : f32
    %41 = vector.broadcast %cst_8 : f32 to vector<1x128xf32>
    %42 = arith.select %40, %41, %39 : vector<1x128xi1>, vector<1x128xf32>
    %c0_9 = arith.constant 0 : index
    %c0_10 = arith.constant 0 : index
    %43 = vector.load %arg3[%c0_9, %c0_10] : memref<1x128xf32, #tpu.memory_space<vmem>>, vector<1x128xf32>
    tpu.vector_store %arg3[%c0_9, %c0_10], %42 {strides = array<i32>} : memref<1x128xf32, #tpu.memory_space<vmem>>, vector<1x128xf32>,
    return
  }
  func.func @transform_0(%arg0: i32) -> (i32, i32) {
    %c0_i32 = arith.constant 0 : i32
    %c0_i32_0 = arith.constant 0 : i32
    return %c0_i32, %arg0 : i32, i32
  }
  func.func @transform_1(%arg0: i32) -> (i32, i32) {
    %c0_i32 = arith.constant 0 : i32
    %c0_i32_0 = arith.constant 0 : i32
    return %c0_i32, %arg0 : i32, i32
  }
  func.func @transform_2(%arg0: i32) -> (i32, i32) {
    %c0_i32 = arith.constant 0 : i32
    %c0_i32_0 = arith.constant 0 : i32
    return %c0_i32, %arg0 : i32, i32
  }
}

</mosaic_0001>

<bundles_post_ra>
// kernel: tpu_custom_call.1
= control target key start
LH: loop header
LB: loop body
LE: loop exit
PB: predicated region body
PF: predicated region fallthrough
CT: control target
= control target key end

     0   :  { %7 = vsyncpa [#allocation3], 0  ;;  %s294_s0 = inlined_call_operand.hbm [shape: f32[11,128], index: 0, kind: input, shape index: {}]   ;;  %s295_s1 = inlined_call_operand.hbm [shape: s32[3,128], index: 1, kind: input, shape index: {}]   ;;  %s296_s2 = inlined_call_operand.hbm [shape: f32[1,128], index: 2, kind: output, shape index: {}]  }
   0x1   :  { %8 = vsyncpa [#allocation6], 0 }
   0x2   :  { %9 = vsyncpa [#allocation4], 0  ;;  %s235_s9 = smov [#allocation2]   ;;  %s163_s13 = scalar_lea.hbm %s294_s0, 256 }
   0x3   :  { %s15_s10 = sshll.u32 %s235_s9, 4  ;;  %p164_p0 = scmp.ne.s32.totalorder %s294_s0, %s163_s13  ;;  %s16_s10 = int_to_ptr.vmem [resolvable:$true] %s15_s10 }
   0x4   :  { %p167_p1 = scmp.lt.u32.totalorder %s163_s13, %s294_s0 }
   0x6   :  { %p169_p2 = pnand %p167_p1, %p164_p0 }
   0x8   :  { %172 = shalt.err (!%p169_p2)
}
   0x9   :  { %s173_s18 = scalar_lea.vmem %s16_s10, 256  ;;  %p178_p4 = scmp.lt.s32.totalorder %s16_s10, %s16_s10 }
   0xa   :  { %p174_p3 = scmp.ne.s32.totalorder %s16_s10, %s173_s18  ;;  %p179_p5 = scmp.lt.s32.totalorder %s173_s18, %s173_s18 }
   0xc   :  { %p180_p6 = por %p179_p5, %p178_p4 }
   0xe   :  { %p181_p7 = pnand %p180_p6, %p174_p3 }
  0x10   :  { %184 = shalt.err (!%p181_p7)
}
  0x11   :  { %s236_s19 = smov 128   ;;  %s237_s20 = smov 8  }
  0x12   :  { %21 = dma.hbm_to_vmem [thread:$0]  %s294_s0, 256, %s16_s10, [#allocation3], %s236_s19, %s236_s19, %s237_s20  }
  0x13   :  { %s238_s23 = smov [#allocation5]   ;;  %s185_s27 = scalar_lea.hbm %s295_s1, 64 }
  0x14   :  { %s28_s24 = sshll.u32 %s238_s23, 4  ;;  %p186_p8 = scmp.ne.s32.totalorder %s295_s1, %s185_s27  ;;  %s29_s24 = int_to_ptr.vmem [resolvable:$true] %s28_s24 }
  0x15   :  { %p189_p9 = scmp.lt.u32.totalorder %s185_s27, %s295_s1 }
  0x17   :  { %p191_p10 = pnand %p189_p9, %p186_p8 }
  0x19   :  { %194 = shalt.err (!%p191_p10)
}
  0x1a   :  { %s195_s4 = scalar_lea.vmem %s29_s24, 64  ;;  %p200_p12 = scmp.lt.s32.totalorder %s29_s24, %s29_s24 }
  0x1b   :  { %p196_p11 = scmp.ne.s32.totalorder %s29_s24, %s195_s4  ;;  %p201_p13 = scmp.lt.s32.totalorder %s195_s4, %s195_s4 }
  0x1d   :  { %p202_p0 = por %p201_p13, %p200_p12 }
  0x1f   :  { %p203_p1 = pnand %p202_p0, %p196_p11 }
  0x21   :  { %206 = shalt.err (!%p203_p1)
}
  0x22   :  { %31 = dma.hbm_to_vmem [thread:$0]  %s295_s1, 64, %s29_s24, [#allocation6]  }
  0x23   :  { %229 = dma.done.wait [#allocation3], 256  }
  0x24   :  { %230 = vsyncadd [#allocation3], 4294967040 }
  0x25   :  { %231 = dma.done.wait [#allocation6], 64  }
  0x26   :  { %232 = vsyncadd [#allocation6], 4294967232  ;;  %v38_v0 = vld [vmem:[#allocation2] sm:$0xff]  ;;  %v39_v1 = vld [vmem:[#allocation2 + $0x8] sm:$0x7]  ;;  %vm78_vm0 = vcmask 1042432   ;;  %v41_v14 = vlaneseq }
  0x27   :  { %v74_v2 = vmul.f32 1.442695, %v38_v0  ;;  %v76_v3 = vmul.f32 1.442695, %v39_v1  ;;  %v40_v16 = vld [vmem:[#allocation5] sm:$0x7] }
  0x28   :  { %v42_v15 = vshrl.u32 %v41_v14, 7  ;;  %v50_v19 = vrot.slane %v40_v16, 1  ;;  %v239_v30 = vmov 0.0   ;;  %s240_s1 = smov [#allocation7]  }
  0x29   :  { %149 = vpow2.f32 %v74_v2  ;;  %s129_s6 = sshll.u32 %s240_s1, 4  ;;  %s130_s6 = int_to_ptr.vmem [resolvable:$true] %s129_s6 }
  0x2a   :  { %151 = vpow2.f32 %v76_v3  ;;  %v66_v18 = vsub.s32 0, %v42_v15  ;;  %v43_v25 = vadd.s32 8, %v42_v15  ;;  %v46_v26 = vsub.s32 1, %v42_v15  ;;  %s207_s7 = scalar_lea.vmem %s130_s6, 16  ;;  %s211_s8 = scalar_lea.vmem %s130_s6, 32 }
  0x2b   :  { %v51_v27 = vadd.s32 %v50_v19, %v40_v16  ;;  %p208_p2 = scmp.ne.s32.totalorder %s130_s6, %s207_s7  ;;  %p212_p3 = scmp.lt.s32.totalorder %s130_s6, %s130_s6 }
  0x2c   :  { %v67_v24 = vrot.slane %v40_v16, %v66_v18  ;;  %v47_v28 = vrot.slane %v40_v16, %v46_v26  ;;  %p213_p4 = scmp.lt.s32.totalorder %s211_s8, %s207_s7 }
  0x2d   :  { %v55_v29 = vrot.slane %v51_v27, %v46_v26 }
  0x2e   :  { %vm68_vm1 = vcmp.eq.s32.totalorder %v42_v15, %v67_v24  ;;  %vm69_vm2 = vcmp.eq.s32.totalorder %v43_v25, %v67_v24  ;;  %vm48_vm3 = vcmp.ge.s32.totalorder %v42_v15, %v47_v28  ;;  %vm49_vm5 = vcmp.ge.s32.totalorder %v43_v25, %v47_v28  ;;  %p214_p5 = por %p213_p4, %p212_p3 }
  0x2f   :  { %v141_v31 = vsel %vm68_vm1, 1.0, %v239_v30  ;;  %v142_v32 = vsel %vm69_vm2, 1.0, %v239_v30  ;;  %vm56_vm4 = vcmp.lt.s32.totalorder %v42_v15, %v55_v29  ;;  %vm57_vm6 = vcmp.lt.s32.totalorder %v43_v25, %v55_v29 }
  0x30   :  { %v96_v36 = vsub.f32 1.0, %v141_v31  ;;  %v97_v39 = vsub.f32 1.0, %v142_v32  ;;  %vm58_vm7 = vmand %vm48_vm3, %vm56_vm4  ;;  %p215_p6 = pnand %p214_p5, %p208_p2 }
  0x31   :  { %vm59_vm8 = vmand %vm49_vm5, %vm57_vm6  ;;  %v139_v46 = vsel %vm58_vm7, 1.0, %v239_v30 }
  0x32   :  { %v140_v48 = vsel %vm59_vm8, 1.0, %v239_v30 }
  0x33   :  { %v150_v4 = vpop.eup %149 }
  0x34   :  { %v152_v5 = vpop.eup %151 }
  0x35   :  { %v79_v6 = vsel %vm78_vm0, %v152_v5, 0.0 }
  0x36   :  { %v80_v7 = vadd.f32 %v150_v4, %v79_v6 }
  0x38   :  { %v81_v8 = vrot.slane %v80_v7, 4 }
  0x3a   :  { %v82_v9 = vadd.f32 %v81_v8, %v80_v7 }
  0x3c   :  { %v83_v10 = vrot.slane %v82_v9, 2 }
  0x3e   :  { %v84_v11 = vadd.f32 %v83_v10, %v82_v9 }
  0x40   :  { %v85_v12 = vrot.slane %v84_v11, 1 }
  0x42   :  { %v86_v13 = vadd.f32 %v85_v12, %v84_v11 }
  0x44   :  { %153 = vrcp.f32 %v86_v13 }
  0x4e   :  { %v154_v17 = vpop.eup %153 }
  0x4f   :  { %v88_v20 = vmul.f32 %v154_v17, %v150_v4  ;;  %v89_v21 = vmul.f32 %v154_v17, %v152_v5 }
  0x51   :  { %155 = vlog2.f32 %v88_v20  ;;  %v98_v22 = vsub.f32 1.0, %v88_v20  ;;  %v99_v23 = vsub.f32 1.0, %v89_v21 }
  0x52   :  { %157 = vlog2.f32 %v89_v21 }
  0x53   :  { %159 = vlog2.f32 %v98_v22 }
  0x54   :  { %161 = vlog2.f32 %v99_v23 }
  0x5b   :  { %v156_v33 = vpop.eup %155 }
  0x5c   :  { %v158_v34 = vpop.eup %157  ;;  %v91_v35 = vmul.f32 0.6931472, %v156_v33 }
  0x5d   :  { %v160_v37 = vpop.eup %159  ;;  %v93_v38 = vmul.f32 0.6931472, %v158_v34 }
  0x5e   :  { %v162_v40 = vpop.eup %161  ;;  %v94_v41 = vmul.f32 %v141_v31, %v91_v35  ;;  %v101_v42 = vmul.f32 0.6931472, %v160_v37 }
  0x5f   :  { %v95_v43 = vmul.f32 %v142_v32, %v93_v38  ;;  %v103_v44 = vmul.f32 0.6931472, %v162_v40 }
  0x60   :  { %v104_v45 = vmul.f32 %v101_v42, %v96_v36 }
  0x61   :  { %v105_v47 = vmul.f32 %v103_v44, %v97_v39 }
  0x62   :  { %v106_v49 = vadd.f32 %v104_v45, %v94_v41 }
  0x63   :  { %v107_v50 = vadd.f32 %v105_v47, %v95_v43 }
  0x64   :  { %v108_v51 = vmul.f32 %v139_v46, %v106_v49 }
  0x65   :  { %v109_v52 = vmul.f32 %v140_v48, %v107_v50 }
  0x67   :  { %v110_v53 = vsel %vm78_vm0, %v109_v52, 0.0 }
  0x68   :  { %v111_v54 = vadd.f32 %v110_v53, %v108_v51 }
  0x6a   :  { %v112_v55 = vrot.slane %v111_v54, 4 }
  0x6c   :  { %v113_v56 = vadd.f32 %v112_v55, %v111_v54 }
  0x6e   :  { %v114_v57 = vrot.slane %v113_v56, 2 }
  0x70   :  { %v115_v58 = vadd.f32 %v114_v57, %v113_v56 }
  0x72   :  { %v116_v59 = vrot.slane %v115_v58, 1 }
  0x74   :  { %v117_v60 = vadd.f32 %v116_v59, %v115_v58 }
  0x76   :  { %v118_v61 = vsub.f32 0.0, %v117_v60 }
  0x78   :  { %v119_v62 = vmul.f32 0.09090909, %v118_v61 }
  0x7a   :  { %vm120_vm9 = vcmp.ne.f32.partialorder %v119_v62, %v119_v62 }
  0x7b   :  { %v121_v63 = vsel %vm120_vm9, 0.0, %v119_v62 }
  0x7c   :  { %122 = vst [vmem:[#allocation7] sm:$0x1] %v121_v63 }
  0x7d   :  { %218 = shalt.err (!%p215_p6)
}
  0x7e   :  { %s219_s11 = scalar_lea.hbm %s296_s2, 16 }
  0x7f   :  { %p220_p7 = scmp.ne.s32.totalorder %s296_s2, %s219_s11  ;;  %p223_p8 = scmp.lt.u32.totalorder %s219_s11, %s296_s2 }
  0x81   :  { %p225_p9 = pnand %p223_p8, %p220_p7 }
  0x83   :  { %228 = shalt.err (!%p225_p9)
}
  0x84   :  { %132 = dma.vmem_to_hbm [thread:$0]  %s130_s6, 16, %s296_s2, [#allocation4]  }
  0x85   :  { %233 = dma.done.wait [#allocation4], 16  }
  0x86   :  { %234 = vsyncadd [#allocation4], 4294967280 }
  0x87   :  { %136 = vsyncpa [#allocation3], 1 }
  0x88   :  { %137 = vsyncpa [#allocation6], 1 }
  0x89   :  { %138 = vsyncpa [#allocation4], 1 }

</bundles_post_ra>
